<compile_context>
chip_gen: v7x
topology: tpu7x:2x2x1
jax: 0.10.0
libtpu: 0.0.40
codegen_flags: <defaults>
</compile_context>

<pallas_src>
import math

import jax
import jax.numpy as jnp
from jax.experimental import pallas as pl
from jax.experimental.pallas import tpu as pltpu

# Small, forward-consistent shapes.
B, S, H = 2, 8, 32
NUM_HEADS = 4
HEAD_DIM = H // NUM_HEADS          # 8
G = B * NUM_HEADS                  # folded (batch, head) groups = 8
QKV = 3 * HEAD_DIM                 # per-head fused [q|k|v] width = 24


def self_attention_kernel(x_ref, w_qkv_ref, b_qkv_ref, w_d_ref, b_d_ref,
                          out_ref, attn_ref):
    """Single invocation over the whole problem.

    x_ref:     (B*S, H)          flattened hidden states
    w_qkv_ref: (H, 3*H)          fused pre-transposed Q/K/V weights, columns
                                 ordered head-major: [q_h | k_h | v_h], h=0..nH-1
    b_qkv_ref: (1, 3*H)          fused bias, same column order
    w_d_ref:   (G, HEAD_DIM, H)  per-(batch,head) row-slices of dense.weight.T
    b_d_ref:   (1, H)
    out_ref:   (B, S, H)
    attn_ref:  (B, NUM_HEADS, S, S)
    """
    x = x_ref[...]                                                  # (B*S, H)

    # ---- fused Q/K/V projection: one lane-dense MXU matmul + one bias add ----
    qkv = jnp.dot(x, w_qkv_ref[...],
                  preferred_element_type=jnp.float32) + b_qkv_ref[0]  # (B*S, 3H)

    # ---- fold (batch, head) into one leading group axis (no transposes) ----
    # Columns are head-major, so head h is a static 3d-wide lane slice; the
    # per-head pieces are stacked along a new *leading* axis (cheap slab
    # stacking, minor dims unchanged).
    parts = [
        qkv[:, h * QKV:(h + 1) * QKV].reshape(B, 1, S, QKV)
        for h in range(NUM_HEADS)
    ]
    qkv_g = jnp.concatenate(parts, axis=1).reshape(G, S, QKV)       # (G, S, 3d)

    q = qkv_g[..., 0 * HEAD_DIM:1 * HEAD_DIM]                       # (G, S, d)
    k = qkv_g[..., 1 * HEAD_DIM:2 * HEAD_DIM]
    v = qkv_g[..., 2 * HEAD_DIM:3 * HEAD_DIM]

    # ---- batched scaled-dot-product attention over all (batch, head) groups ----
    scale = 1.0 / math.sqrt(HEAD_DIM)
    scores = jnp.einsum('gqd,gkd->gqk', q, k,
                        preferred_element_type=jnp.float32) * scale  # (G, S, S)

    m = jnp.max(scores, axis=-1, keepdims=True)
    e = jnp.exp(scores - m)
    # Shared reciprocal; exact (approx=True would be fine if ~1e-3 error is OK).
    probs = e * pl.reciprocal(jnp.sum(e, axis=-1, keepdims=True), approx=False)
    ctx = jnp.einsum('gqk,gkd->gqd', probs, v,
                     preferred_element_type=jnp.float32)             # (G, S, d)

    # ---- output projection: per-head matmul + head-sum ----
    # sum_h ctx_h @ Wd.T[h*d:(h+1)*d, :] == concat_heads(ctx) @ Wd.T
    out_g = jnp.einsum('gsd,gdk->gsk', ctx, w_d_ref[...],
                       preferred_element_type=jnp.float32)           # (G, S, H)
    out_g = out_g.reshape(B, NUM_HEADS, S, H)
    out = out_g[:, 0]
    for h in range(1, NUM_HEADS):        # static unroll over NUM_HEADS terms
        out = out + out_g[:, h]
    out_ref[...] = out + b_d_ref[0]                                  # (B, S, H)

    # ---- second output: |scores| / sum|scores|, one contiguous store ----
    a = jnp.abs(scores)
    attn = a * pl.reciprocal(jnp.sum(a, axis=-1, keepdims=True), approx=False)
    attn_ref[...] = attn.reshape(B, NUM_HEADS, S, S)


def self_attention(hidden_states, params):
    """hidden_states: (B, S, H) float32.  Returns (output, normalized |scores|)."""
    wq, bq, wk, bk, wv, bv, wd, bd = params
    # PyTorch nn.Linear weights are (out, in); transpose so kernel does x @ W_t.
    wq_t, wk_t, wv_t, wd_t = wq.T, wk.T, wv.T, wd.T

    # Fused QKV weight/bias with head-major column ordering [q_h | k_h | v_h].
    w_cols, b_cols = [], []
    for h in range(NUM_HEADS):
        sl = slice(h * HEAD_DIM, (h + 1) * HEAD_DIM)
        w_cols += [wq_t[:, sl], wk_t[:, sl], wv_t[:, sl]]
        b_cols += [bq[sl], bk[sl], bv[sl]]
    w_qkv = jnp.concatenate(w_cols, axis=1)              # (H, 3H)
    b_qkv = jnp.concatenate(b_cols).reshape(1, 3 * H)    # (1, 3H)

    # Dense weight pre-split per (batch, head) group: (G, d, H).
    wd_heads = wd_t.reshape(NUM_HEADS, HEAD_DIM, H)
    w_d_g = jnp.broadcast_to(
        wd_heads[None], (B, NUM_HEADS, HEAD_DIM, H)).reshape(G, HEAD_DIM, H)
    b_d = bd.reshape(1, H)

    x2 = hidden_states.reshape(B * S, H)

    flops = (2 * (B * S) * H * (3 * H)       # fused QKV projection
             + 2 * G * S * S * HEAD_DIM      # q @ k^T
             + 2 * G * S * S * HEAD_DIM      # probs @ v
             + 2 * G * S * HEAD_DIM * H      # output projection
             + 8 * G * S * S)                # softmax / abs normalisation
    bytes_accessed = 4 * (x2.size + w_qkv.size + b_qkv.size + w_d_g.size
                          + b_d.size + B * S * H + B * NUM_HEADS * S * S)

    vmem_spec = pl.BlockSpec(memory_space=pltpu.MemorySpace.VMEM)
    out, attn = pl.pallas_call(
        self_attention_kernel,
        out_shape=(jax.ShapeDtypeStruct((B, S, H), jnp.float32),
                   jax.ShapeDtypeStruct((B, NUM_HEADS, S, S), jnp.float32)),
        in_specs=[vmem_spec] * 5,
        out_specs=(vmem_spec, vmem_spec),
        cost_estimate=pl.CostEstimate(flops=flops,
                                      transcendentals=G * S * S,
                                      bytes_accessed=bytes_accessed),
    )(x2, w_qkv, b_qkv, w_d_g, b_d)
    return out, attn


def self_attention_ref(x, params):
    """Pure-JAX reference mirroring the PyTorch forward exactly."""
    wq, bq, wk, bk, wv, bv, wd, bd = params

    def linear(a, w, b):
        return a @ w.T + b

    def heads(a):  # (B, S, H) -> (B, nH, S, d)
        return a.reshape(B, S, NUM_HEADS, HEAD_DIM).transpose(0, 2, 1, 3)

    q = heads(linear(x, wq, bq))
    k = heads(linear(x, wk, bk))
    v = heads(linear(x, wv, bv))

    scores = jnp.einsum("bhqd,bhkd->bhqk", q, k) / math.sqrt(HEAD_DIM)
    probs = jax.nn.softmax(scores, axis=-1)
    ctx = jnp.einsum("bhqk,bhkd->bhqd", probs, v)
    ctx = ctx.transpose(0, 2, 1, 3).reshape(B, S, H)
    out = linear(ctx, wd, bd)

    a = jnp.abs(scores)
    if NUM_HEADS == 1:
        a = a[:, 0]
    attn = a / jnp.sum(a, axis=-1, keepdims=True)
    return out, attn


def init_params(key):
    ks = jax.random.split(key, 8)
    bound = 1.0 / math.sqrt(H)

    def w(k):
        return jax.random.uniform(k, (H, H), jnp.float32, -bound, bound)

    def b(k):
        return jax.random.uniform(k, (H,), jnp.float32, -bound, bound)

    return (w(ks[0]), b(ks[1]),   # query
            w(ks[2]), b(ks[3]),   # key
            w(ks[4]), b(ks[5]),   # value
            w(ks[6]), b(ks[7]))   # dense


if __name__ == "__main__":
    key = jax.random.PRNGKey(0)
    k_x, k_p = jax.random.split(key)
    x = jax.random.normal(k_x, (B, S, H), jnp.float32)
    params = init_params(k_p)

    out, attn = self_attention(x, params)
    out = jax.block_until_ready(out)
    attn = jax.block_until_ready(attn)

    out_ref, attn_ref = self_attention_ref(x, params)
    assert jnp.allclose(out, out_ref, atol=1e-5, rtol=1e-5)
    assert jnp.allclose(attn, attn_ref, atol=1e-5, rtol=1e-5)

    print("KERNEL_OK")
</pallas_src>

<mosaic_0001>
module attributes {stable_mosaic.version = 11 : i64} {
  func.func @self_attention_kernel(%arg0: memref<16x32xf32, #tpu.memory_space<vmem>>, %arg1: memref<32x96xf32, #tpu.memory_space<vmem>>, %arg2: memref<1x96xf32, #tpu.memory_space<vmem>>, %arg3: memref<8x8x32xf32, #tpu.memory_space<vmem>>, %arg4: memref<1x32xf32, #tpu.memory_space<vmem>>, %arg5: memref<2x8x32xf32, #tpu.memory_space<vmem>>, %arg6: memref<2x4x8x8xf32, #tpu.memory_space<vmem>>) attributes {dimension_semantics = [], scalar_prefetch = 0 : i64, scratch_operands = 0 : i64, tpu.core_type = #tpu.core_type<tc>} {
    %c0 = arith.constant 0 : index
    %c0_0 = arith.constant 0 : index
    %0 = vector.load %arg0[%c0, %c0_0] : memref<16x32xf32, #tpu.memory_space<vmem>>, vector<16x32xf32>
    %c0_1 = arith.constant 0 : index
    %c0_2 = arith.constant 0 : index
    %1 = vector.load %arg1[%c0_1, %c0_2] : memref<32x96xf32, #tpu.memory_space<vmem>>, vector<32x96xf32>
    %cst = arith.constant dense<0.000000e+00> : vector<16x96xf32>
    %2 = tpu.matmul %0, %1, %cst {dimension_numbers = #tpu.dot_dimension_numbers<[1], [0], [0], [1], [0, 0, 1, 1], [], []>} : vector<16x32xf32>, vector<32x96xf32>, vector<16x96xf32> -> vector<16x96xf32>
    %c0_3 = arith.constant 0 : index
    %c0_4 = arith.constant 0 : index
    %3 = vector.load %arg2[%c0_3, %c0_4] : memref<1x96xf32, #tpu.memory_space<vmem>>, vector<1x96xf32>
    %4 = vector.shape_cast %3 : vector<1x96xf32> to vector<96xf32>
    %5 = vector.shape_cast %4 : vector<96xf32> to vector<1x96xf32>
    %6 = vector.broadcast %5 : vector<1x96xf32> to vector<16x96xf32>
    %7 = arith.addf %2, %6 : vector<16x96xf32>
    %8 = vector.extract_strided_slice %7 {offsets = [0, 0], sizes = [16, 24], strides = [1, 1]} : vector<16x96xf32> to vector<16x24xf32>
    %9 = vector.shape_cast %8 : vector<16x24xf32> to vector<2x1x8x24xf32>
    %10 = vector.extract_strided_slice %7 {offsets = [0, 24], sizes = [16, 24], strides = [1, 1]} : vector<16x96xf32> to vector<16x24xf32>
    %11 = vector.shape_cast %10 : vector<16x24xf32> to vector<2x1x8x24xf32>
    %12 = vector.extract_strided_slice %7 {offsets = [0, 48], sizes = [16, 24], strides = [1, 1]} : vector<16x96xf32> to vector<16x24xf32>
    %13 = vector.shape_cast %12 : vector<16x24xf32> to vector<2x1x8x24xf32>
    %14 = vector.extract_strided_slice %7 {offsets = [0, 72], sizes = [16, 24], strides = [1, 1]} : vector<16x96xf32> to vector<16x24xf32>
    %15 = vector.shape_cast %14 : vector<16x24xf32> to vector<2x1x8x24xf32>
    %16 = tpu.concatenate %9, %11, %13, %15 in 1 : vector<2x1x8x24xf32>, vector<2x1x8x24xf32>, vector<2x1x8x24xf32>, vector<2x1x8x24xf32> -> vector<2x4x8x24xf32>
    %17 = vector.shape_cast %16 : vector<2x4x8x24xf32> to vector<8x8x24xf32>
    %18 = vector.extract_strided_slice %17 {offsets = [0, 0, 0], sizes = [8, 8, 8], strides = [1, 1, 1]} : vector<8x8x24xf32> to vector<8x8x8xf32>
    %19 = vector.extract_strided_slice %17 {offsets = [0, 0, 8], sizes = [8, 8, 8], strides = [1, 1, 1]} : vector<8x8x24xf32> to vector<8x8x8xf32>
    %20 = vector.extract_strided_slice %17 {offsets = [0, 0, 16], sizes = [8, 8, 8], strides = [1, 1, 1]} : vector<8x8x24xf32> to vector<8x8x8xf32>
    "tpu.trace_start"() <{level = 10 : i32, message = "gqd,gkd->gqk"}> : () -> ()
    %cst_5 = arith.constant dense<0.000000e+00> : vector<8x8x8xf32>
    %21 = tpu.matmul %18, %19, %cst_5 {dimension_numbers = #tpu.dot_dimension_numbers<[2], [2], [1], [1], [0, 0, 0, 1, 1, 1], [0], [0]>} : vector<8x8x8xf32>, vector<8x8x8xf32>, vector<8x8x8xf32> -> vector<8x8x8xf32>
    "tpu.trace_stop"() : () -> ()
    %cst_6 = arith.constant 0.353553385 : f32
    %22 = vector.broadcast %cst_6 : f32 to vector<8x8x8xf32>
    %23 = arith.mulf %21, %22 : vector<8x8x8xf32>
    %cst_7 = arith.constant dense<0xFF800000> : vector<8x8xf32>
    %24 = vector.multi_reduction <maximumf>, %23, %cst_7 [2] : vector<8x8x8xf32> to vector<8x8xf32>
    %25 = vector.shape_cast %24 : vector<8x8xf32> to vector<8x8x1xf32>
    %26 = vector.broadcast %25 : vector<8x8x1xf32> to vector<8x8x8xf32>
    %27 = arith.subf %23, %26 : vector<8x8x8xf32>
    %28 = math.exp %27 : vector<8x8x8xf32>
    %cst_8 = arith.constant dense<0.000000e+00> : vector<8x8xf32>
    %29 = vector.multi_reduction <add>, %28, %cst_8 [2] : vector<8x8x8xf32> to vector<8x8xf32>
    %30 = vector.shape_cast %29 : vector<8x8xf32> to vector<8x8x1xf32>
    %31 = tpu.reciprocal %30 : vector<8x8x1xf32> -> vector<8x8x1xf32>
    %32 = vector.broadcast %31 : vector<8x8x1xf32> to vector<8x8x8xf32>
    %33 = arith.mulf %28, %32 : vector<8x8x8xf32>
    "tpu.trace_start"() <{level = 10 : i32, message = "gqk,gkd->gqd"}> : () -> ()
    %cst_9 = arith.constant dense<0.000000e+00> : vector<8x8x8xf32>
    %34 = tpu.matmul %33, %20, %cst_9 {dimension_numbers = #tpu.dot_dimension_numbers<[2], [1], [1], [2], [0, 0, 0, 1, 1, 2], [0], [0]>} : vector<8x8x8xf32>, vector<8x8x8xf32>, vector<8x8x8xf32> -> vector<8x8x8xf32>
    "tpu.trace_stop"() : () -> ()
    %c0_10 = arith.constant 0 : index
    %c0_11 = arith.constant 0 : index
    %c0_12 = arith.constant 0 : index
    %35 = vector.load %arg3[%c0_10, %c0_11, %c0_12] : memref<8x8x32xf32, #tpu.memory_space<vmem>>, vector<8x8x32xf32>
    "tpu.trace_start"() <{level = 10 : i32, message = "gsd,gdk->gsk"}> : () -> ()
    %cst_13 = arith.constant dense<0.000000e+00> : vector<8x8x32xf32>
    %36 = tpu.matmul %34, %35, %cst_13 {dimension_numbers = #tpu.dot_dimension_numbers<[2], [1], [1], [2], [0, 0, 0, 1, 1, 2], [0], [0]>} : vector<8x8x8xf32>, vector<8x8x32xf32>, vector<8x8x32xf32> -> vector<8x8x32xf32>
    "tpu.trace_stop"() : () -> ()
    %37 = vector.shape_cast %36 : vector<8x8x32xf32> to vector<2x4x8x32xf32>
    %38 = vector.extract_strided_slice %37 {offsets = [0, 0, 0, 0], sizes = [2, 1, 8, 32], strides = [1, 1, 1, 1]} : vector<2x4x8x32xf32> to vector<2x1x8x32xf32>
    %39 = vector.shape_cast %38 : vector<2x1x8x32xf32> to vector<2x8x32xf32>
    %40 = vector.extract_strided_slice %37 {offsets = [0, 1, 0, 0], sizes = [2, 1, 8, 32], strides = [1, 1, 1, 1]} : vector<2x4x8x32xf32> to vector<2x1x8x32xf32>
    %41 = vector.shape_cast %40 : vector<2x1x8x32xf32> to vector<2x8x32xf32>
    %42 = arith.addf %39, %41 : vector<2x8x32xf32>
    %43 = vector.extract_strided_slice %37 {offsets = [0, 2, 0, 0], sizes = [2, 1, 8, 32], strides = [1, 1, 1, 1]} : vector<2x4x8x32xf32> to vector<2x1x8x32xf32>
    %44 = vector.shape_cast %43 : vector<2x1x8x32xf32> to vector<2x8x32xf32>
    %45 = arith.addf %42, %44 : vector<2x8x32xf32>
    %46 = vector.extract_strided_slice %37 {offsets = [0, 3, 0, 0], sizes = [2, 1, 8, 32], strides = [1, 1, 1, 1]} : vector<2x4x8x32xf32> to vector<2x1x8x32xf32>
    %47 = vector.shape_cast %46 : vector<2x1x8x32xf32> to vector<2x8x32xf32>
    %48 = arith.addf %45, %47 : vector<2x8x32xf32>
    %c0_14 = arith.constant 0 : index
    %c0_15 = arith.constant 0 : index
    %49 = vector.load %arg4[%c0_14, %c0_15] : memref<1x32xf32, #tpu.memory_space<vmem>>, vector<1x32xf32>
    %50 = vector.shape_cast %49 : vector<1x32xf32> to vector<32xf32>
    %51 = vector.shape_cast %50 : vector<32xf32> to vector<1x1x32xf32>
    %52 = vector.broadcast %51 : vector<1x1x32xf32> to vector<2x8x32xf32>
    %53 = arith.addf %48, %52 : vector<2x8x32xf32>
    %c0_16 = arith.constant 0 : index
    %c0_17 = arith.constant 0 : index
    %c0_18 = arith.constant 0 : index
    %54 = vector.load %arg5[%c0_16, %c0_17, %c0_18] : memref<2x8x32xf32, #tpu.memory_space<vmem>>, vector<2x8x32xf32>
    tpu.vector_store %arg5[%c0_16, %c0_17, %c0_18], %53 {strides = array<i32>} : memref<2x8x32xf32, #tpu.memory_space<vmem>>, vector<2x8x32xf32>,
    %55 = math.absf %23 : vector<8x8x8xf32>
    %cst_19 = arith.constant dense<0.000000e+00> : vector<8x8xf32>
    %56 = vector.multi_reduction <add>, %55, %cst_19 [2] : vector<8x8x8xf32> to vector<8x8xf32>
    %57 = vector.shape_cast %56 : vector<8x8xf32> to vector<8x8x1xf32>
    %58 = tpu.reciprocal %57 : vector<8x8x1xf32> -> vector<8x8x1xf32>
    %59 = vector.broadcast %58 : vector<8x8x1xf32> to vector<8x8x8xf32>
    %60 = arith.mulf %55, %59 : vector<8x8x8xf32>
    %61 = vector.shape_cast %60 : vector<8x8x8xf32> to vector<2x4x8x8xf32>
    %c0_20 = arith.constant 0 : index
    %c0_21 = arith.constant 0 : index
    %c0_22 = arith.constant 0 : index
    %c0_23 = arith.constant 0 : index
    %62 = vector.load %arg6[%c0_20, %c0_21, %c0_22, %c0_23] : memref<2x4x8x8xf32, #tpu.memory_space<vmem>>, vector<2x4x8x8xf32>
    tpu.vector_store %arg6[%c0_20, %c0_21, %c0_22, %c0_23], %61 {strides = array<i32>} : memref<2x4x8x8xf32, #tpu.memory_space<vmem>>, vector<2x4x8x8xf32>,
    return
  }
}

</mosaic_0001>

<bundles_post_ra>
// kernel: tpu_custom_call.1
= control target key start
LH: loop header
LB: loop body
LE: loop exit
PB: predicated region body
PF: predicated region fallthrough
CT: control target
= control target key end

     0   :  { %12 = vsyncpa [#allocation3], 0  ;;  %s3033_s0 = inlined_call_operand.hbm [shape: f32[16,32], index: 0, kind: input, shape index: {}]   ;;  %s3034_s1 = inlined_call_operand.hbm [shape: f32[32,96], index: 1, kind: input, shape index: {}]   ;;  %s3035_s2 = inlined_call_operand.vmem [shape: f32[1,96], index: 2, kind: input, shape index: {}]   ;;  %s3036_s3 = inlined_call_operand.hbm [shape: f32[8,8,32], index: 3, kind: input, shape index: {}]   ;;  %s3037_s4 = inlined_call_operand.vmem [shape: f32[1,32], index: 4, kind: input, shape index: {}]   ;;  %s3038_s5 = inlined_call_operand.hbm [shape: f32[2,8,32], index: 5, kind: output, shape index: {0}]   ;;  %s3039_s6 = inlined_call_operand.hbm [shape: f32[2,4,8,8], index: 6, kind: output, shape index: {1}]  }
   0x1   :  { %13 = vsyncpa [#allocation6], 0 }
   0x2   :  { %14 = vsyncpa [#allocation4], 0 }
   0x3   :  { %15 = vsyncpa [#allocation10], 0  ;;  %s2595_s21 = smov [#allocation5]   ;;  %s2596_s23 = smov [#allocation2]  }
   0x4   :  { %s33_s22 = sshll.u32 %s2595_s21, 4  ;;  %s21_s24 = sshll.u32 %s2596_s23, 4  ;;  %s34_s22 = int_to_ptr.vmem [resolvable:$true] %s33_s22  ;;  %s2644_s24 = int_to_ptr.vmem [resolvable:$true] %s21_s24 }
   0x5   :  { %s2477_s27 = scalar_lea.hbm %s3034_s1, 512 }
   0x6   :  { %p2478_p0 = scmp.ne.s32.totalorder %s3034_s1, %s2477_s27  ;;  %p2481_p1 = scmp.lt.u32.totalorder %s2477_s27, %s3034_s1 }
   0x8   :  { %p2483_p2 = pnand %p2481_p1, %p2478_p0 }
   0xa   :  { %2486 = shalt.err (!%p2483_p2)
}
   0xb   :  { %s2487_s8 = scalar_lea.vmem %s34_s22, 512  ;;  %p2492_p4 = scmp.lt.s32.totalorder %s34_s22, %s34_s22 }
   0xc   :  { %p2488_p3 = scmp.ne.s32.totalorder %s34_s22, %s2487_s8  ;;  %p2493_p5 = scmp.lt.s32.totalorder %s2487_s8, %s2487_s8 }
   0xe   :  { %p2494_p6 = por %p2493_p5, %p2492_p4 }
  0x10   :  { %p2495_p7 = pnand %p2494_p6, %p2488_p3 }
  0x12   :  { %2498 = shalt.err (!%p2495_p7)
}
  0x13   :  { %s2597_s9 = smov 128   ;;  %s2598_s10 = smov 8  }
  0x14   :  { %39 = dma.hbm_to_vmem [thread:$0]  %s3034_s1, 512, %s34_s22, [#allocation6], %s2597_s9, %s2597_s9, %s2598_s10  }
  0x15   :  { %s2499_s15 = scalar_lea.hbm %s3033_s0, 256 }
  0x16   :  { %p2500_p8 = scmp.ne.s32.totalorder %s3033_s0, %s2499_s15  ;;  %p2503_p9 = scmp.lt.u32.totalorder %s2499_s15, %s3033_s0 }
  0x18   :  { %p2505_p10 = pnand %p2503_p9, %p2500_p8 }
  0x1a   :  { %2508 = shalt.err (!%p2505_p10)
}
  0x1b   :  { %s2509_s20 = scalar_lea.vmem %s2644_s24, 256  ;;  %p2514_p12 = scmp.lt.s32.totalorder %s2644_s24, %s2644_s24 }
  0x1c   :  { %p2510_p11 = scmp.ne.s32.totalorder %s2644_s24, %s2509_s20  ;;  %p2515_p13 = scmp.lt.s32.totalorder %s2509_s20, %s2509_s20 }
  0x1e   :  { %p2516_p0 = por %p2515_p13, %p2514_p12 }
  0x20   :  { %p2517_p1 = pnand %p2516_p0, %p2510_p11 }
  0x22   :  { %2520 = shalt.err (!%p2517_p1)
}
  0x23   :  { %27 = dma.hbm_to_vmem [thread:$0]  %s3033_s0, 256, %s2644_s24, [#allocation3], %s2597_s9, %s2597_s9, %s2598_s10  }
  0x24   :  { %s2599_s22 = smov [#allocation7]   ;;  %s2521_s27 = scalar_lea.hbm %s3036_s3, 1024 }
  0x25   :  { %s47_s23 = sshll.u32 %s2599_s22, 4  ;;  %p2522_p2 = scmp.ne.s32.totalorder %s3036_s3, %s2521_s27  ;;  %s48_s23 = int_to_ptr.vmem [resolvable:$true] %s47_s23 }
  0x26   :  { %p2525_p3 = scmp.lt.u32.totalorder %s2521_s27, %s3036_s3 }
  0x28   :  { %p2527_p4 = pnand %p2525_p3, %p2522_p2 }
  0x2a   :  { %2530 = shalt.err (!%p2527_p4)
}
  0x2b   :  { %s2531_s8 = scalar_lea.vmem %s48_s23, 1024  ;;  %p2536_p6 = scmp.lt.s32.totalorder %s48_s23, %s48_s23 }
  0x2c   :  { %p2532_p5 = scmp.ne.s32.totalorder %s48_s23, %s2531_s8  ;;  %p2537_p7 = scmp.lt.s32.totalorder %s2531_s8, %s2531_s8 }
  0x2e   :  { %p2538_p8 = por %p2537_p7, %p2536_p6 }
  0x30   :  { %p2539_p9 = pnand %p2538_p8, %p2532_p5 }
  0x32   :  { %2542 = shalt.err (!%p2539_p9)
}
  0x33   :  { %53 = dma.hbm_to_vmem [thread:$0]  %s3036_s3, 1024, %s48_s23, [#allocation6], %s2597_s9, %s2597_s9, %s2598_s10  }
  0x34   :  { %2587 = dma.done.wait [#allocation3], 256  }
  0x35   :  { %2588 = vsyncadd [#allocation3], 4294967040 }
  0x36   :  { %2589 = dma.done.wait [#allocation6], 1536  }
  0x37   :  { %2590 = vsyncadd [#allocation6], 4294965760  ;;  %vm78_vm0 = vcmask 261120   ;;  %v67_v0 = vld [vmem:[#allocation5] sm:$0xff]  ;;  %v68_v1 = vld [vmem:[#allocation5 + $0x8] sm:$0xff]  ;;  %v2600_v10 = vmov 0.0  }
  0x38   :  { %v69_v2 = vld [vmem:[#allocation5 + $0x10] sm:$0xff]  ;;  %v2407_v3 = vpack.c.bf16 %v68_v1, %v67_v0  ;;  %v70_v4 = vld [vmem:[#allocation5 + $0x18] sm:$0xff]  ;;  %2287 = vmatprep.subr.mxu1 %v2600_v10  ;;  %s2601_s12 = smov 56   ;;  %s2602_s13 = smov 104   ;;  %vm2603_vm1 = vmmov 0   ;;  %vm176_vm2 = vcmask 64512  }
  0x39   :  { %v65_v5 = vld [vmem:[#allocation2] sm:$0xff]  ;;  %v2411_v6 = vpack.c.bf16 %v70_v4, %v69_v2  ;;  %v66_v7 = vld [vmem:[#allocation2 + $0x8] sm:$0xff]  ;;  %2289 = vmatprep.mubr.msk.f32.mxu1 %vm2603_vm1, %v2600_v10  ;;  %s2605_s14 = smov 120   ;;  %s2606_s15 = smov 112  }
  0x3a   :  { %2284 = vmatprep.mubr.msk.f32.mxu0 %vm78_vm0, %v65_v5  ;;  %2408 = vmatprep.subr.bf16.mxu0 %v2407_v3  ;;  %v2186_v8 = vld [vmem:[%s3035_s2] ss:$0 sm:$0xff]  ;;  %s2604_s2 = smov 80   ;;  %s2607_s16 = smov [#allocation9]  }
  0x3b   :  { %2410 = vmatpush3.bf16.msra.mxu0 %v2407_v3  ;;  %s2169_s17 = sshll.u32 %s2607_s16, 4  ;;  %s2170_s17 = int_to_ptr.vmem [resolvable:$true] %s2169_s17 }
  0x3c   :  { %2412 = vmatprep.subr.bf16.mxu0 %v2411_v6  ;;  %s2543_s18 = scalar_lea.vmem %s2170_s17, 1024  ;;  %p2548_p11 = scmp.lt.s32.totalorder %s2170_s17, %s2170_s17 }
  0x3d   :  { %p2544_p10 = scmp.ne.s32.totalorder %s2170_s17, %s2543_s18  ;;  %p2549_p12 = scmp.lt.s32.totalorder %s2543_s18, %s2543_s18 }
  0x3f   :  { %2414 = vmatpush3.bf16.msra.mxu0 %v2411_v6  ;;  %p2550_p13 = por %p2549_p12, %p2548_p11 }
  0x40   :  { %2297 = vmatprep.subr.mxu0 %v2600_v10 }
  0x41   :  { %p2551_p0 = pnand %p2550_p13, %p2544_p10 }
  0x42   :  { %2285 = vmatmul.mubr.msk.f32.vlgmr.msra.gmra.mrb[0].mxu0 %vm78_vm0, %v66_v7 }
  0x43   :  { %2299 = vmatprep.mubr.msk.f32.mxu0 %vm2603_vm1, %v2600_v10 }
 0x115   :  { %v2286_v9 = vpop.f32.mrb[0].mxu0 }
 0x116   :  { %v151_v11 = vpop.f32.mrb[1].mxu0  ;;  %v2711_v13 = vadd.f32 %v2286_v9, %v2186_v8 }
 0x117   :  { %v2703_v12 = vadd.f32 %v2186_v8, %v151_v11 }
 0x119   :  { %170 = vrot.lane.b32.xlu1 %v2703_v12, %s2601_s12  ;;  %162 = vrot.lane.b32.xlu0 %v2703_v12, %s2602_s13 }
 0x11d   :  { %164 = vrot.lane.b32.xlu1 %v2711_v13, %s2602_s13  ;;  %166 = vrot.lane.b32.xlu0 %v2703_v12, %s2604_s2 }
 0x121   :  { %172 = vrot.lane.b32.xlu1 %v2711_v13, %s2601_s12  ;;  %168 = vrot.lane.b32.xlu0 %v2711_v13, %s2604_s2 }
 0x125   :  { %174 = vrot.lane.b32.xlu0 %v2703_v12, %s2605_s14 }
 0x18b   :  { %v2718_v14 = vpop.permute.xlu1 %170  ;;  %v2720_v15 = vpop.permute.xlu0 %162 }
 0x18c   :  { %251 = vrot.lane.b32.xlu1 %v2720_v15, %s2605_s14 }
 0x18f   :  { %v2723_v16 = vpop.permute.xlu0 %166  ;;  %v2727_v17 = vpop.permute.xlu1 %164 }
 0x190   :  { %403 = vrot.lane.b32.xlu1 %v2718_v14, %s2605_s14  ;;  %327 = vrot.lane.b32.xlu0 %v2723_v16, %s2605_s14 }
 0x193   :  { %v2729_v18 = vpop.permute.xlu0 %168  ;;  %v2733_v19 = vpop.permute.xlu1 %172 }
 0x194   :  { %555 = vrot.lane.b32.xlu1 %v2727_v17, %s2605_s14  ;;  %479 = vrot.lane.b32.xlu0 %v2711_v13, %s2605_s14 }
 0x197   :  { %v175_v20 = vpop.permute.xlu0 %174 }
 0x198   :  { %707 = vrot.lane.b32.xlu1 %v2733_v19, %s2605_s14  ;;  %631 = vrot.lane.b32.xlu0 %v2729_v18, %s2605_s14 }
 0x199   :  { %2288 = vmatpush3.xpose.msk.msra.mxu1 %vm176_vm2, %v175_v20 }
 0x19a   :  { %2292 = vmatprep.subr.mxu1 %v2600_v10 }
 0x19c   :  { %2290 = vmatmul.mubr.msk.f32.vlgmr.msra.gmra.mrb[0].mxu1 %vm176_vm2, %v2703_v12 }
 0x19d   :  { %2294 = vmatprep.mubr.msk.f32.mxu1 %vm2603_vm1, %v2600_v10 }
 0x1fe   :  { %v252_v21 = vpop.permute.xlu1 %251 }
 0x1ff   :  { %2293 = vmatpush3.xpose.msk.msra.mxu1 %vm176_vm2, %v252_v21 }
 0x200   :  { %2302 = vmatprep.subr.mxu1 %v2600_v10 }
 0x202   :  { %v404_v22 = vpop.permute.xlu1 %403  ;;  %2295 = vmatmul.mubr.msk.f32.vlgmr.msra.gmra.mrb[2].mxu1 %vm176_vm2, %v2720_v15  ;;  %v328_v23 = vpop.permute.xlu0 %327 }
 0x203   :  { %2298 = vmatpush3.xpose.msk.msra.mxu0 %vm176_vm2, %v328_v23  ;;  %2303 = vmatpush3.xpose.msk.msra.mxu1 %vm176_vm2, %v404_v22 }
 0x204   :  { %2304 = vmatprep.mubr.msk.f32.mxu1 %vm2603_vm1, %v2600_v10  ;;  %2307 = vmatprep.subr.mxu0 %v2600_v10 }
 0x205   :  { %2312 = vmatprep.subr.mxu1 %v2600_v10 }
 0x206   :  { %v556_v24 = vpop.permute.xlu1 %555  ;;  %2300 = vmatmul.mubr.msk.f32.vlgmr.msra.gmra.mrb[2].mxu0 %vm176_vm2, %v2723_v16  ;;  %2305 = vmatmul.mubr.msk.f32.vlgmr.msra.gmra.mrb[4].mxu1 %vm176_vm2, %v2718_v14  ;;  %v480_v25 = vpop.permute.xlu0 %479 }
 0x207   :  { %2308 = vmatpush3.xpose.msk.msra.mxu0 %vm176_vm2, %v480_v25  ;;  %2313 = vmatpush3.xpose.msk.msra.mxu1 %vm176_vm2, %v556_v24 }
 0x208   :  { %2309 = vmatprep.mubr.msk.f32.mxu0 %vm2603_vm1, %v2600_v10  ;;  %2314 = vmatprep.mubr.msk.f32.mxu1 %vm2603_vm1, %v2600_v10 }
 0x209   :  { %2317 = vmatprep.subr.mxu0 %v2600_v10  ;;  %2322 = vmatprep.subr.mxu1 %v2600_v10 }
 0x20a   :  { %v708_v26 = vpop.permute.xlu1 %707  ;;  %2310 = vmatmul.mubr.msk.f32.vlgmr.msra.gmra.mrb[4].mxu0 %vm176_vm2, %v2711_v13  ;;  %2315 = vmatmul.mubr.msk.f32.vlgmr.msra.gmra.mrb[6].mxu1 %vm176_vm2, %v2727_v17  ;;  %v632_v27 = vpop.permute.xlu0 %631 }
 0x20b   :  { %2318 = vmatpush3.xpose.msk.msra.mxu0 %vm176_vm2, %v632_v27  ;;  %2323 = vmatpush3.xpose.msk.msra.mxu1 %vm176_vm2, %v708_v26 }
 0x20c   :  { %2319 = vmatprep.mubr.msk.f32.mxu0 %vm2603_vm1, %v2600_v10  ;;  %2324 = vmatprep.mubr.msk.f32.mxu1 %vm2603_vm1, %v2600_v10 }
 0x20d   :  { %2327 = vmatprep.subr.mxu0 %v2600_v10  ;;  %2332 = vmatprep.subr.mxu1 %v2600_v10 }
 0x20e   :  { %2320 = vmatmul.mubr.msk.f32.vlgmr.msra.gmra.mrb[6].mxu0 %vm176_vm2, %v2729_v18  ;;  %2325 = vmatmul.mubr.msk.f32.vlgmr.msra.gmra.mrb[8].mxu1 %vm176_vm2, %v2733_v19 }
 0x20f   :  { %2329 = vmatprep.mubr.msk.f32.mxu0 %vm2603_vm1, %v2600_v10  ;;  %2334 = vmatprep.mubr.msk.f32.mxu1 %vm2603_vm1, %v2600_v10 }
 0x26f   :  { %v247_v28 = vpop.f32.mrb[0].mxu1 }
 0x270   :  { %v2785_v29 = vmul.f32 0.35355338, %v247_v28  ;;  %v2291_v30 = vpop.f32.mrb[1].mxu1 }
 0x272   :  { %v791_v31 = vsel %vm176_vm2, %v2785_v29, -inf }
 0x273   :  { %792 = vmax.xlane.f32.xlu0 %v791_v31 }
 0x2d5   :  { %v323_v32 = vpop.f32.mrb[2].mxu1 }
 0x2d6   :  { %v2789_v33 = vmul.f32 0.35355338, %v323_v32  ;;  %v2296_v34 = vpop.f32.mrb[3].mxu1 }
 0x2d8   :  { %v794_v35 = vsel %vm176_vm2, %v2789_v33, -inf }
 0x2d9   :  { %795 = vmax.xlane.f32.xlu1 %v794_v35  ;;  %v399_v36 = vpop.f32.mrb[2].mxu0  ;;  %v475_v37 = vpop.f32.mrb[4].mxu1 }
 0x2da   :  { %v2793_v38 = vmul.f32 0.35355338, %v399_v36  ;;  %v2301_v39 = vpop.f32.mrb[3].mxu0  ;;  %v2306_v40 = vpop.f32.mrb[5].mxu1  ;;  %v2795_v41 = vmul.f32 0.35355338, %v475_v37 }
 0x2dc   :  { %v797_v42 = vsel %vm176_vm2, %v2793_v38, -inf  ;;  %v800_v49 = vsel %vm176_vm2, %v2795_v41, -inf }
 0x2dd   :  { %v627_v43 = vpop.f32.mrb[6].mxu1  ;;  %798 = vmax.xlane.f32.xlu0 %v797_v42  ;;  %v551_v44 = vpop.f32.mrb[4].mxu0 }
 0x2de   :  { %v2799_v45 = vmul.f32 0.35355338, %v551_v44  ;;  %v2311_v46 = vpop.f32.mrb[5].mxu0  ;;  %v2316_v47 = vpop.f32.mrb[7].mxu1  ;;  %v2801_v48 = vmul.f32 0.35355338, %v627_v43 }
 0x2e0   :  { %v803_v50 = vsel %vm176_vm2, %v2799_v45, -inf  ;;  %v806_v57 = vsel %vm176_vm2, %v2801_v48, -inf }
 0x2e1   :  { %v779_v51 = vpop.f32.mrb[8].mxu1  ;;  %801 = vmax.xlane.f32.xlu0 %v800_v49  ;;  %804 = vmax.xlane.f32.xlu1 %v803_v50  ;;  %v703_v52 = vpop.f32.mrb[6].mxu0 }
 0x2e2   :  { %v2807_v53 = vmul.f32 0.35355338, %v703_v52  ;;  %v2321_v54 = vpop.f32.mrb[7].mxu0  ;;  %v2326_v55 = vpop.f32.mrb[9].mxu1  ;;  %v2809_v56 = vmul.f32 0.35355338, %v779_v51 }
 0x2e3   :  { %v2097_v51 = vand.u32 2147483647, %v2789_v33  ;;  %v2100_v54 = vand.u32 2147483647, %v2799_v45 }
 0x2e4   :  { %v809_v58 = vsel %vm176_vm2, %v2807_v53, -inf  ;;  %v812_v59 = vsel %vm176_vm2, %v2809_v56, -inf  ;;  %v2102_v55 = vand.u32 2147483647, %v2807_v53 }
 0x2e5   :  { %807 = vmax.xlane.f32.xlu0 %v806_v57  ;;  %810 = vmax.xlane.f32.xlu1 %v809_v58  ;;  %v2107_v52 = vsel %vm176_vm2, %v2097_v51, 0.0  ;;  %v2098_v58 = vand.u32 2147483647, %v2793_v38 }
 0x2e9   :  { %813 = vmax.xlane.f32.xlu0 %v812_v59 }
 0x2f6   :  { %879 = vrot.lane.b32.xlu1 %v2703_v12, %s2606_s15 }
 0x2fa   :  { %1031 = vrot.lane.b32.xlu1 %v2723_v16, %s2606_s15 }
 0x2fe   :  { %1107 = vrot.lane.b32.xlu1 %v2718_v14, %s2606_s15 }
 0x2ff   :  { %955 = vrot.lane.b32.xlu0 %v2720_v15, %s2606_s15 }
 0x300   :  { %v793_v60 = vpop.xlane.xlu0 %792 }
 0x301   :  { %v815_v61 = vsub.f32 %v2785_v29, %v793_v60 }
 0x302   :  { %1259 = vrot.lane.b32.xlu1 %v2727_v17, %s2606_s15 }
 0x303   :  { %1183 = vrot.lane.b32.xlu0 %v2711_v13, %s2606_s15  ;;  %v823_v62 = vmul.f32 1.442695, %v815_v61  ;;  %v2122_v61 = vsel %vm176_vm2, %v2102_v55, 0.0 }
 0x305   :  { %2429 = vpow2.f32 %v823_v62  ;;  %v2110_v62 = vsel %vm176_vm2, %v2098_v58, 0.0 }
 0x30f   :  { %v2830_v63 = vpop.eup %2429 }
 0x310   :  { %v839_v0 = vsel %vm176_vm2, %v2830_v63, 0.0 }
 0x326   :  { %840 = vadd.xlane.f32.xlu1 %v839_v0  ;;  %v2099_v0 = vand.u32 2147483647, %v2795_v41 }
 0x366   :  { %v796_v1 = vpop.xlane.xlu1 %795 }
 0x367   :  { %v816_v2 = vsub.f32 %v2789_v33, %v796_v1  ;;  %v2101_v1 = vand.u32 2147483647, %v2801_v48 }
 0x369   :  { %v825_v3 = vmul.f32 1.442695, %v816_v2  ;;  %v2119_v2 = vsel %vm176_vm2, %v2101_v1, 0.0 }
 0x36a   :  { %v799_v4 = vpop.xlane.xlu0 %798 }
 0x36b   :  { %2431 = vpow2.f32 %v825_v3  ;;  %v817_v5 = vsub.f32 %v2793_v38, %v799_v4  ;;  %v2103_v3 = vand.u32 2147483647, %v2809_v56 }
 0x36d   :  { %v827_v6 = vmul.f32 1.442695, %v817_v5  ;;  %v2125_v4 = vsel %vm176_vm2, %v2103_v3, 0.0 }
 0x36e   :  { %v805_v7 = vpop.xlane.xlu1 %804  ;;  %v802_v8 = vpop.xlane.xlu0 %801 }
 0x36f   :  { %2433 = vpow2.f32 %v827_v6  ;;  %v819_v9 = vsub.f32 %v2799_v45, %v805_v7  ;;  %v818_v11 = vsub.f32 %v2795_v41, %v802_v8  ;;  %v1489_v41 = vld [vmem:[#allocation7 + $0x10] sm:$0xff] }
 0x371   :  { %v831_v12 = vmul.f32 1.442695, %v819_v9  ;;  %v829_v13 = vmul.f32 1.442695, %v818_v11 }
 0x372   :  { %v811_v14 = vpop.xlane.xlu1 %810  ;;  %v808_v15 = vpop.xlane.xlu0 %807 }
 0x373   :  { %2435 = vpow2.f32 %v831_v12  ;;  %v821_v16 = vsub.f32 %v2807_v53, %v811_v14  ;;  %v820_v17 = vsub.f32 %v2801_v48, %v808_v15  ;;  %v1490_v48 = vld [vmem:[#allocation7 + $0x18] sm:$0xff] }
 0x374   :  { %2437 = vpow2.f32 %v829_v13 }
 0x375   :  { %v2840_v20 = vpop.eup %2431  ;;  %v835_v21 = vmul.f32 1.442695, %v821_v16  ;;  %v833_v22 = vmul.f32 1.442695, %v820_v17 }
 0x376   :  { %v880_v23 = vpop.permute.xlu1 %879  ;;  %v814_v24 = vpop.xlane.xlu0 %813  ;;  %v842_v25 = vsel %vm176_vm2, %v2840_v20, 0.0 }
 0x377   :  { %2439 = vpow2.f32 %v835_v21  ;;  %v822_v26 = vsub.f32 %v2809_v56, %v814_v24  ;;  %843 = vadd.xlane.f32.xlu0 %v842_v25  ;;  %2328 = vmatpush3.msra.mxu0 %v880_v23 }
 0x378   :  { %2441 = vpow2.f32 %v833_v22  ;;  %2337 = vmatprep.subr.mxu0 %v2600_v10 }
 0x379   :  { %v2846_v27 = vpop.eup %2433  ;;  %v837_v28 = vmul.f32 1.442695, %v822_v26 }
 0x37a   :  { %v956_v30 = vpop.permute.xlu0 %955  ;;  %v845_v31 = vsel %vm176_vm2, %v2846_v27, 0.0  ;;  %v1032_v46 = vpop.permute.xlu1 %1031 }
 0x37b   :  { %2443 = vpow2.f32 %v837_v28  ;;  %846 = vadd.xlane.f32.xlu1 %v845_v31  ;;  %2333 = vmatpush3.msra.mxu1 %v956_v30  ;;  %v1487_v28 = vld [vmem:[#allocation7] sm:$0xff] }
 0x37c   :  { %2342 = vmatprep.subr.mxu1 %v2600_v10 }
 0x37d   :  { %v2851_v32 = vpop.eup %2435 }
 0x37e   :  { %v2853_v34 = vpop.eup %2437  ;;  %v851_v35 = vsel %vm176_vm2, %v2851_v32, 0.0  ;;  %v1108_v47 = vpop.permute.xlu1 %1107 }
 0x37f   :  { %852 = vadd.xlane.f32.xlu1 %v851_v35  ;;  %v848_v36 = vsel %vm176_vm2, %v2853_v34, 0.0  ;;  %v1184_v5 = vpop.permute.xlu0 %1183 }
 0x380   :  { %849 = vadd.xlane.f32.xlu0 %v848_v36 }
 0x381   :  { %v2859_v37 = vpop.eup %2439 }
 0x382   :  { %v2861_v39 = vpop.eup %2441  ;;  %v857_v40 = vsel %vm176_vm2, %v2859_v37, 0.0  ;;  %v2875_v49 = vpop.permute.xlu1 %1259 }
 0x383   :  { %858 = vadd.xlane.f32.xlu1 %v857_v40  ;;  %v854_v42 = vsel %vm176_vm2, %v2861_v39, 0.0 }
 0x384   :  { %855 = vadd.xlane.f32.xlu0 %v854_v42 }
 0x385   :  { %v2867_v43 = vpop.eup %2443 }
 0x386   :  { %v860_v44 = vsel %vm176_vm2, %v2867_v43, 0.0 }
 0x388   :  { %861 = vadd.xlane.f32.xlu0 %v860_v44 }
 0x394   :  { %1411 = vrot.lane.b32.xlu1 %v2733_v19, %s2606_s15  ;;  %v2096_v19 = vand.u32 2147483647, %v2785_v29 }
 0x396   :  { %v2104_v57 = vsel %vm176_vm2, %v2096_v19, 0.0 }
 0x39e   :  { %1335 = vrot.lane.b32.xlu0 %v2729_v18, %s2606_s15  ;;  %v2116_v18 = vsel %vm176_vm2, %v2100_v54, 0.0 }
 0x3b3   :  { %v841_v50 = vpop.xlane.xlu1 %840 }
 0x3b4   :  { %2445 = vrcp.f32 %v841_v50 }
 0x3b8   :  { %2108 = vadd.xlane.f32.xlu1 %v2107_v52 }
 0x3bc   :  { %2117 = vadd.xlane.f32.xlu1 %v2116_v18 }
 0x3bd   :  { %2105 = vadd.xlane.f32.xlu0 %v2104_v57 }
 0x3be   :  { %v2446_v59 = vpop.eup %2445 }
 0x3bf   :  { %v871_v60 = vmul.f32 %v2446_v59, %v2830_v63  ;;  %v2113_v63 = vsel %vm176_vm2, %v2099_v0, 0.0 }
 0x3c0   :  { %2123 = vadd.xlane.f32.xlu1 %v2122_v61 }
 0x3c1   :  { %2111 = vadd.xlane.f32.xlu0 %v2110_v62  ;;  %2330 = vmatmul.mubr.msk.f32.vlgmr.msra.gmra.mrb[8].mxu0 %vm176_vm2, %v871_v60  ;;  %v1491_v62 = vld [vmem:[#allocation7 + $0x20] sm:$0xff] }
 0x3c2   :  { %2338 = vmatpush3.msra.mxu0 %v1032_v46  ;;  %2339 = vmatprep.mubr.msk.f32.mxu0 %vm2603_vm1, %v2600_v10 }
 0x3c3   :  { %2347 = vmatprep.subr.mxu0 %v2600_v10 }
 0x3c5   :  { %2114 = vadd.xlane.f32.xlu0 %v2113_v63 }
 0x3c9   :  { %2120 = vadd.xlane.f32.xlu0 %v2119_v2 }
 0x3cd   :  { %2126 = vadd.xlane.f32.xlu0 %v2125_v4 }
 0x404   :  { %v844_v6 = vpop.xlane.xlu0 %843 }
 0x405   :  { %2447 = vrcp.f32 %v844_v6 }
 0x408   :  { %v847_v7 = vpop.xlane.xlu1 %846 }
 0x409   :  { %2449 = vrcp.f32 %v847_v7 }
 0x40c   :  { %v853_v8 = vpop.xlane.xlu1 %852 }
 0x40d   :  { %2451 = vrcp.f32 %v853_v8  ;;  %v850_v9 = vpop.xlane.xlu0 %849  ;;  %v1494_v8 = vld [vmem:[#allocation7 + $0x38] sm:$0xff] }
 0x40e   :  { %2453 = vrcp.f32 %v850_v9 }
 0x40f   :  { %v2448_v11 = vpop.eup %2447 }
 0x410   :  { %v872_v12 = vmul.f32 %v2448_v11, %v2840_v20  ;;  %v859_v13 = vpop.xlane.xlu1 %858 }
 0x411   :  { %2455 = vrcp.f32 %v859_v13  ;;  %v856_v14 = vpop.xlane.xlu0 %855 }
 0x412   :  { %2457 = vrcp.f32 %v856_v14  ;;  %2335 = vmatmul.mubr.msk.f32.vlgmr.msra.gmra.mrb[10].mxu1 %vm176_vm2, %v872_v12 }
 0x413   :  { %v2450_v15 = vpop.eup %2449  ;;  %2343 = vmatpush3.msra.mxu1 %v1108_v47  ;;  %2344 = vmatprep.mubr.msk.f32.mxu1 %vm2603_vm1, %v2600_v10 }
 0x414   :  { %v873_v16 = vmul.f32 %v2450_v15, %v2846_v27  ;;  %2352 = vmatprep.subr.mxu1 %v2600_v10  ;;  %v1412_v31 = vpop.permute.xlu1 %1411 }
 0x415   :  { %v862_v17 = vpop.xlane.xlu0 %861 }
 0x416   :  { %2459 = vrcp.f32 %v862_v17  ;;  %2340 = vmatmul.mubr.msk.f32.vlgmr.msra.gmra.mrb[10].mxu0 %vm176_vm2, %v873_v16 }
 0x417   :  { %v2452_v20 = vpop.eup %2451  ;;  %2348 = vmatpush3.msra.mxu0 %v1184_v5  ;;  %2349 = vmatprep.mubr.msk.f32.mxu0 %vm2603_vm1, %v2600_v10 }
 0x418   :  { %v2454_v21 = vpop.eup %2453  ;;  %v875_v22 = vmul.f32 %v2452_v20, %v2851_v32  ;;  %2357 = vmatprep.subr.mxu0 %v2600_v10 }
 0x419   :  { %v874_v23 = vmul.f32 %v2454_v21, %v2853_v34  ;;  %v1336_v24 = vpop.permute.xlu0 %1335 }
 0x41a   :  { %2350 = vmatmul.mubr.msk.f32.vlgmr.msra.gmra.mrb[12].mxu0 %vm176_vm2, %v875_v22 }
 0x41b   :  { %v2456_v25 = vpop.eup %2455  ;;  %2345 = vmatmul.mubr.msk.f32.vlgmr.msra.gmra.mrb[12].mxu1 %vm176_vm2, %v874_v23  ;;  %2358 = vmatpush3.msra.mxu0 %v1336_v24 }
 0x41c   :  { %v2458_v26 = vpop.eup %2457  ;;  %v877_v27 = vmul.f32 %v2456_v25, %v2859_v37  ;;  %2353 = vmatpush3.msra.mxu1 %v2875_v49  ;;  %2354 = vmatprep.mubr.msk.f32.mxu1 %vm2603_vm1, %v2600_v10 }
 0x41d   :  { %v876_v30 = vmul.f32 %v2458_v26, %v2861_v39  ;;  %2359 = vmatprep.mubr.msk.f32.mxu0 %vm2603_vm1, %v2600_v10  ;;  %2362 = vmatprep.subr.mxu1 %v2600_v10 }
 0x41e   :  { %2360 = vmatmul.mubr.msk.f32.vlgmr.msra.gmra.mrb[14].mxu0 %vm176_vm2, %v877_v27  ;;  %2367 = vmatprep.subr.mxu0 %v2600_v10 }
 0x41f   :  { %2355 = vmatmul.mubr.msk.f32.vlgmr.msra.gmra.mrb[14].mxu1 %vm176_vm2, %v876_v30  ;;  %2368 = vmatpush3.msra.mxu0 %v1487_v28 }
 0x420   :  { %v2460_v32 = vpop.eup %2459  ;;  %2363 = vmatpush3.msra.mxu1 %v1412_v31  ;;  %2364 = vmatprep.mubr.msk.f32.mxu1 %vm2603_vm1, %v2600_v10 }
 0x421   :  { %v878_v34 = vmul.f32 %v2460_v32, %v2867_v43  ;;  %2369 = vmatprep.mubr.msk.f32.mxu0 %vm2603_vm1, %v2600_v10  ;;  %2372 = vmatprep.subr.mxu1 %v2600_v10 }
 0x422   :  { %2377 = vmatprep.subr.mxu0 %v2600_v10 }
 0x423   :  { %2365 = vmatmul.mubr.msk.f32.vlgmr.msra.gmra.mrb[16].mxu1 %vm176_vm2, %v878_v34 }
 0x424   :  { %2374 = vmatprep.mubr.msk.f32.mxu1 %vm2603_vm1, %v2600_v10 }
 0x445   :  { %v2109_v35 = vpop.xlane.xlu1 %2108 }
 0x446   :  { %2461 = vrcp.f32 %v2109_v35 }
 0x449   :  { %v2118_v36 = vpop.xlane.xlu1 %2117 }
 0x44a   :  { %2463 = vrcp.f32 %v2118_v36  ;;  %v2106_v37 = vpop.xlane.xlu0 %2105 }
 0x44b   :  { %2465 = vrcp.f32 %v2106_v37 }
 0x44d   :  { %v2124_v39 = vpop.xlane.xlu1 %2123 }
 0x44e   :  { %2467 = vrcp.f32 %v2124_v39  ;;  %v2112_v40 = vpop.xlane.xlu0 %2111 }
 0x44f   :  { %2469 = vrcp.f32 %v2112_v40 }
 0x450   :  { %v2462_v42 = vpop.eup %2461 }
 0x451   :  { %v2137_v43 = vmul.f32 %v2462_v42, %v2097_v51 }
 0x452   :  { %v2115_v44 = vpop.xlane.xlu0 %2114 }
 0x453   :  { %2145 = vst.msk [vmem:[#allocation9 + $0x8] sm:$0xff] %vm176_vm2, %v2137_v43  ;;  %2471 = vrcp.f32 %v2115_v44 }
 0x454   :  { %v2464_v46 = vpop.eup %2463 }
 0x455   :  { %v2466_v47 = vpop.eup %2465  ;;  %v2140_v49 = vmul.f32 %v2464_v46, %v2100_v54 }
 0x456   :  { %v2136_v50 = vmul.f32 %v2466_v47, %v2096_v19  ;;  %v2121_v52 = vpop.xlane.xlu0 %2120  ;;  %v1488_v19 = vld [vmem:[#allocation7 + $0x8] sm:$0xff] }
 0x457   :  { %2148 = vst.msk [vmem:[#allocation9 + $0x20] sm:$0xff] %vm176_vm2, %v2140_v49  ;;  %2473 = vrcp.f32 %v2121_v52  ;;  %2373 = vmatpush3.msra.mxu1 %v1488_v19 }
 0x458   :  { %v2468_v18 = vpop.eup %2467  ;;  %2144 = vst.msk [vmem:[#allocation9] sm:$0xff] %vm176_vm2, %v2136_v50  ;;  %2382 = vmatprep.subr.mxu1 %v2600_v10 }
 0x459   :  { %v2470_v33 = vpop.eup %2469  ;;  %v2142_v51 = vmul.f32 %v2468_v18, %v2102_v55 }
 0x45a   :  { %v2138_v57 = vmul.f32 %v2470_v33, %v2098_v58  ;;  %v2127_v59 = vpop.xlane.xlu0 %2126 }
 0x45b   :  { %2150 = vst.msk [vmem:[#allocation9 + $0x30] sm:$0xff] %vm176_vm2, %v2142_v51  ;;  %2475 = vrcp.f32 %v2127_v59 }
 0x45c   :  { %2146 = vst.msk [vmem:[#allocation9 + $0x10] sm:$0xff] %vm176_vm2, %v2138_v57 }
 0x45d   :  { %v2472_v29 = vpop.eup %2471 }
 0x45e   :  { %v2139_v45 = vmul.f32 %v2472_v29, %v2099_v0 }
 0x460   :  { %2147 = vst.msk [vmem:[#allocation9 + $0x18] sm:$0xff] %vm176_vm2, %v2139_v45 }
 0x461   :  { %v2474_v54 = vpop.eup %2473 }
 0x462   :  { %v2141_v53 = vmul.f32 %v2474_v54, %v2101_v1  ;;  %v1493_v1 = vld [vmem:[#allocation7 + $0x30] sm:$0xff] }
 0x464   :  { %2149 = vst.msk [vmem:[#allocation9 + $0x28] sm:$0xff] %vm176_vm2, %v2141_v53 }
 0x465   :  { %v2476_v38 = vpop.eup %2475 }
 0x466   :  { %v2143_v55 = vmul.f32 %v2476_v38, %v2103_v3  ;;  %v1492_v3 = vld [vmem:[#allocation7 + $0x28] sm:$0xff] }
 0x468   :  { %2151 = vst.msk [vmem:[#allocation9 + $0x38] sm:$0xff] %vm176_vm2, %v2143_v55 }
 0x494   :  { %v951_v58 = vpop.f32.mrb[8].mxu0 }
 0x495   :  { %v2331_v60 = vpop.f32.mrb[9].mxu0  ;;  %2370 = vmatmul.mubr.msk.f32.vlgmr.msra.gmra.mrb[16].mxu0 %vm176_vm2, %v951_v58 }
 0x496   :  { %2378 = vmatpush3.msra.mxu0 %v1489_v41  ;;  %2379 = vmatprep.mubr.msk.f32.mxu0 %vm2603_vm1, %v2600_v10 }
 0x497   :  { %2387 = vmatprep.subr.mxu0 %v2600_v10 }
 0x4e5   :  { %v1027_v61 = vpop.f32.mrb[10].mxu1 }
 0x4e6   :  { %v2336_v56 = vpop.f32.mrb[11].mxu1  ;;  %2375 = vmatmul.mubr.msk.f32.vlgmr.msra.gmra.mrb[18].mxu1 %vm176_vm2, %v1027_v61 }
 0x4e7   :  { %2383 = vmatpush3.msra.mxu1 %v1490_v48  ;;  %2384 = vmatprep.mubr.msk.f32.mxu1 %vm2603_vm1, %v2600_v10 }
 0x4e8   :  { %2392 = vmatprep.subr.mxu1 %v2600_v10 }
 0x4e9   :  { %v1103_v0 = vpop.f32.mrb[10].mxu0 }
 0x4ea   :  { %v2341_v63 = vpop.f32.mrb[11].mxu0  ;;  %2380 = vmatmul.mubr.msk.f32.vlgmr.msra.gmra.mrb[18].mxu0 %vm176_vm2, %v1103_v0 }
 0x4eb   :  { %2388 = vmatpush3.msra.mxu0 %v1491_v62  ;;  %2389 = vmatprep.mubr.msk.f32.mxu0 %vm2603_vm1, %v2600_v10 }
 0x4ec   :  { %2397 = vmatprep.subr.mxu0 %v2600_v10 }
 0x4ed   :  { %v1255_v2 = vpop.f32.mrb[12].mxu0 }
 0x4ee   :  { %v1179_v4 = vpop.f32.mrb[12].mxu1  ;;  %v2351_v5 = vpop.f32.mrb[13].mxu0  ;;  %2390 = vmatmul.mubr.msk.f32.vlgmr.msra.gmra.mrb[20].mxu0 %vm176_vm2, %v1255_v2 }
 0x4ef   :  { %v2346_v6 = vpop.f32.mrb[13].mxu1  ;;  %2385 = vmatmul.mubr.msk.f32.vlgmr.msra.gmra.mrb[20].mxu1 %vm176_vm2, %v1179_v4  ;;  %2398 = vmatpush3.msra.mxu0 %v1493_v1 }
 0x4f0   :  { %2393 = vmatpush3.msra.mxu1 %v1492_v3  ;;  %2394 = vmatprep.mubr.msk.f32.mxu1 %vm2603_vm1, %v2600_v10 }
 0x4f1   :  { %v1407_v7 = vpop.f32.mrb[14].mxu0  ;;  %2399 = vmatprep.mubr.msk.f32.mxu0 %vm2603_vm1, %v2600_v10  ;;  %2402 = vmatprep.subr.mxu1 %v2600_v10 }
 0x4f2   :  { %v1331_v9 = vpop.f32.mrb[14].mxu1  ;;  %v2361_v11 = vpop.f32.mrb[15].mxu0  ;;  %2400 = vmatmul.mubr.msk.f32.vlgmr.msra.gmra.mrb[22].mxu0 %vm176_vm2, %v1407_v7 }
 0x4f3   :  { %v2356_v12 = vpop.f32.mrb[15].mxu1  ;;  %2395 = vmatmul.mubr.msk.f32.vlgmr.msra.gmra.mrb[22].mxu1 %vm176_vm2, %v1331_v9 }
 0x4f4   :  { %2403 = vmatpush3.msra.mxu1 %v1494_v8  ;;  %2404 = vmatprep.mubr.msk.f32.mxu1 %vm2603_vm1, %v2600_v10 }
 0x4f6   :  { %v1483_v13 = vpop.f32.mrb[16].mxu1 }
 0x4f7   :  { %v2366_v14 = vpop.f32.mrb[17].mxu1  ;;  %2405 = vmatmul.mubr.msk.f32.vlgmr.msra.gmra.mrb[24].mxu1 %vm176_vm2, %v1483_v13 }
 0x4f8   :  { %2554 = shalt.err (!%p2551_p0)
}
 0x4f9   :  { %s2555_s1 = scalar_lea.hbm %s3039_s6, 1024 }
 0x4fa   :  { %p2556_p1 = scmp.ne.s32.totalorder %s3039_s6, %s2555_s1  ;;  %p2559_p2 = scmp.lt.u32.totalorder %s2555_s1, %s3039_s6 }
 0x4fc   :  { %p2561_p3 = pnand %p2559_p2, %p2556_p1 }
 0x4fe   :  { %2564 = shalt.err (!%p2561_p3)
}
 0x4ff   :  { %2175 = dma.vmem_to_hbm [thread:$0]  %s2170_s17, 1024, %s3039_s6, [#allocation10], %s2597_s9, %s2597_s9, %s2598_s10  }
 0x500   :  { %v2221_v26 = vld [vmem:[%s3037_s4] ss:$0 sm:$0xff]  ;;  %s2608_s6 = smov [#allocation8]  }
 0x501   :  { %s2157_s30 = sshll.u32 %s2608_s6, 4  ;;  %s2158_s30 = int_to_ptr.vmem [resolvable:$true] %s2157_s30 }
 0x502   :  { %s2565_s4 = scalar_lea.vmem %s2158_s30, 256  ;;  %p2570_p5 = scmp.lt.s32.totalorder %s2158_s30, %s2158_s30 }
 0x503   :  { %p2566_p4 = scmp.ne.s32.totalorder %s2158_s30, %s2565_s4  ;;  %p2571_p6 = scmp.lt.s32.totalorder %s2565_s4, %s2565_s4 }
 0x505   :  { %p2572_p7 = por %p2571_p6, %p2570_p5 }
 0x507   :  { %p2573_p8 = pnand %p2572_p7, %p2566_p4 }
 0x568   :  { %v1564_v10 = vpop.f32.mrb[16].mxu0 }
 0x569   :  { %v2371_v15 = vpop.f32.mrb[17].mxu0 }
 0x5b9   :  { %v1637_v16 = vpop.f32.mrb[18].mxu1 }
 0x5ba   :  { %v2079_v17 = vadd.f32 %v1637_v16, %v1564_v10  ;;  %v2376_v20 = vpop.f32.mrb[19].mxu1 }
 0x5bd   :  { %v1710_v21 = vpop.f32.mrb[18].mxu0 }
 0x5be   :  { %v2081_v22 = vadd.f32 %v2079_v17, %v1710_v21  ;;  %v2381_v23 = vpop.f32.mrb[19].mxu0 }
 0x5c1   :  { %v1856_v24 = vpop.f32.mrb[20].mxu0 }
 0x5c2   :  { %v1783_v25 = vpop.f32.mrb[20].mxu1  ;;  %v2391_v27 = vpop.f32.mrb[21].mxu0 }
 0x5c3   :  { %v2083_v28 = vadd.f32 %v2081_v22, %v1783_v25  ;;  %v2386_v30 = vpop.f32.mrb[21].mxu1 }
 0x5c5   :  { %v2092_v31 = vadd.f32 %v2221_v26, %v2083_v28  ;;  %v2002_v32 = vpop.f32.mrb[22].mxu0 }
 0x5c6   :  { %v1929_v34 = vpop.f32.mrb[22].mxu1  ;;  %v2401_v35 = vpop.f32.mrb[23].mxu0 }
 0x5c7   :  { %2094 = vst.msk [vmem:[#allocation8] sm:$0xff] %vm78_vm0, %v2092_v31  ;;  %v2080_v36 = vadd.f32 %v1929_v34, %v1856_v24  ;;  %v2396_v37 = vpop.f32.mrb[23].mxu1 }
 0x5c9   :  { %v2082_v39 = vadd.f32 %v2080_v36, %v2002_v32 }
 0x5ca   :  { %v2075_v40 = vpop.f32.mrb[24].mxu1 }
 0x5cb   :  { %v2084_v42 = vadd.f32 %v2082_v39, %v2075_v40  ;;  %v2406_v43 = vpop.f32.mrb[25].mxu1 }
 0x5cd   :  { %v2093_v44 = vadd.f32 %v2221_v26, %v2084_v42 }
 0x5cf   :  { %2095 = vst.msk [vmem:[#allocation8 + $0x8] sm:$0xff] %vm78_vm0, %v2093_v44 }
 0x5d0   :  { %2576 = shalt.err (!%p2573_p8)
}
 0x5d1   :  { %s2577_s0 = scalar_lea.hbm %s3038_s5, 256 }
 0x5d2   :  { %p2578_p9 = scmp.ne.s32.totalorder %s3038_s5, %s2577_s0  ;;  %p2581_p10 = scmp.lt.u32.totalorder %s2577_s0, %s3038_s5 }
 0x5d4   :  { %p2583_p11 = pnand %p2581_p10, %p2578_p9 }
 0x5d6   :  { %2586 = shalt.err (!%p2583_p11)
}
 0x5d7   :  { %2163 = dma.vmem_to_hbm [thread:$0]  %s2158_s30, 256, %s3038_s5, [#allocation4], %s2597_s9, %s2597_s9, %s2598_s10  }
 0x5d8   :  { %2591 = dma.done.wait [#allocation4], 256  }
 0x5d9   :  { %2592 = vsyncadd [#allocation4], 4294967040 }
 0x5da   :  { %2593 = dma.done.wait [#allocation10], 1024  }
 0x5db   :  { %2594 = vsyncadd [#allocation10], 4294966272 }
 0x5dc   :  { %2182 = vsyncpa [#allocation3], 1 }
 0x5dd   :  { %2183 = vsyncpa [#allocation6], 1 }
 0x5de   :  { %2184 = vsyncpa [#allocation4], 1 }
 0x5df   :  { %2185 = vsyncpa [#allocation10], 1 }

</bundles_post_ra>
